<compile_context>
chip_gen: v5e
topology: v5e:2x2
jax: 0.10.0
libtpu: 0.0.40
codegen_flags: <defaults>
</compile_context>

<pallas_src>
import functools

import jax
import jax.numpy as jnp
from jax.experimental import pallas as pl
from jax.experimental.pallas import tpu as pltpu


def discriminator_kernel(p_ref, w1_ref, b1_ref, wfb_ref, bfb_ref,
                         gam_ref, bet_ref, wf_ref, bf_ref, o_ref):
    # ---- first_layer: k x k conv (valid, stride 1) == one MXU matmul ----
    # w1_ref: (C, k*k) bf16, p_ref: (k*k, M) f32 patches, b1_ref: (C, 1) f32
    h = jnp.dot(w1_ref[...], p_ref[...].astype(jnp.bfloat16),
                preferred_element_type=jnp.float32) + b1_ref[...]      # (C, M) f32
    C, M = h.shape
    inv_m = 1.0 / M
    eps = 1e-5

    # ---- feature_block: [1x1 conv -> BatchNorm2d (batch stats) -> ReLU] * L ----
    L = wfb_ref.shape[0]
    for l in range(L):                                   # static unroll over layers
        h = jnp.dot(wfb_ref[l], h.astype(jnp.bfloat16),
                    preferred_element_type=jnp.float32) + bfb_ref[l]   # (C, M) f32
        # Fused single-pass BN stats: one lane-axis reduction over [h ; h*h].
        # (f32 post-matmul activations, so E[x^2]-E[x]^2 cancellation is acceptable.)
        stats = jnp.sum(jnp.concatenate([h, h * h], axis=0),
                        axis=1, keepdims=True) * inv_m                 # (2C, 1)
        mean = stats[:C]                                               # (C, 1)
        var = stats[C:] - mean * mean                                  # biased, like torch
        scale = jax.lax.rsqrt(var + eps) * gam_ref[l]                  # gamma folded in
        shift = bet_ref[l] - mean * scale
        h = jnp.maximum(h * scale + shift, 0.0)                        # BN + ReLU (f32 VPU)

    # ---- final_layer: 1x1 conv C -> 1 + sigmoid, lane-dense (1, M) store ----
    logits = jnp.dot(wf_ref[...], h.astype(jnp.bfloat16),
                     preferred_element_type=jnp.float32) + bf_ref[...]  # (1, M)
    o_ref[...] = jax.nn.sigmoid(logits)


@jax.jit
def discriminator_forward(x_nchw, params):
    """x_nchw: (N, 1, H, W) float32, PyTorch layout. Returns (N, 1, Ho, Wo)."""
    N, Cin, H, W = x_nchw.shape
    assert Cin == 1
    w1, b1, wfb, bfb, gam, bet, wf, bf = params
    C, kk = w1.shape
    k = int(round(kk ** 0.5))
    Ho, Wo = H - k + 1, W - k + 1
    M = N * Ho * Wo

    # im2col (zero FLOPs), transposed to (k*k, M) so every tap row is a
    # contiguous, 128-lane-dense HBM->VMEM transfer.
    x = x_nchw[:, 0]                                                   # (N, H, W)
    patches = jnp.stack(
        [x[:, dy:dy + Ho, dx:dx + Wo] for dy in range(k) for dx in range(k)],
        axis=0).reshape(k * k, M)                                      # (k*k, M)

    vmem = functools.partial(pl.BlockSpec, memory_space=pltpu.MemorySpace.VMEM)
    out_flat = pl.pallas_call(
        discriminator_kernel,
        out_shape=jax.ShapeDtypeStruct((1, M), jnp.float32),           # lane-dense
        in_specs=[vmem()] * 9,
        out_specs=vmem(),
        compiler_params=pltpu.CompilerParams(
            # Let XLA fuse the wrapper-side im2col producer into the patches
            # operand (saves a separate HBM round trip at these tiny shapes).
            allow_input_fusion=[True] + [False] * 8),
    )(patches,
      w1.astype(jnp.bfloat16), b1,
      wfb.astype(jnp.bfloat16), bfb, gam, bet,
      wf.astype(jnp.bfloat16), bf)

    # back to PyTorch NCHW
    return out_flat.reshape(N, Ho, Wo)[:, None, :, :]


# ----------------------- parameter construction (glue) -----------------------

def spectral_normalize(weight, n_iter=10):
    """Divide weight by its largest singular value (torch spectral_norm),
    estimated with deterministic power iteration on the (out, -1) matrix."""
    # TODO(synk): PyTorch's spectral_norm keeps a persistent random u buffer
    # updated once per forward; import torch's u/v (or sigma) to bit-match.
    out_ch = weight.shape[0]
    w_mat = weight.reshape(out_ch, -1)
    u = jnp.full((out_ch,), 1.0 / jnp.sqrt(out_ch), weight.dtype)
    v = None
    for _ in range(n_iter):
        v = w_mat.T @ u
        v = v / (jnp.linalg.norm(v) + 1e-12)
        u = w_mat @ v
        u = u / (jnp.linalg.norm(u) + 1e-12)
    sigma = u @ (w_mat @ v)
    return weight / sigma


def init_params(key, D_chan, D_kernel_size, n_feature_layers):
    """Channels-major parameter layouts for the (C, M) kernel."""
    C, k, L = D_chan, D_kernel_size, n_feature_layers
    keys = jax.random.split(key, 6)

    # first_layer: Conv2d(1, C, k) with spectral norm (torch OIHW weights)
    w1_t = spectral_normalize(
        jax.random.normal(keys[0], (C, 1, k, k), jnp.float32) * 0.1)
    w1 = w1_t[:, 0].reshape(C, k * k)            # (C, k*k), taps (dy, dx) row-major
    b1 = jax.random.normal(keys[1], (C, 1), jnp.float32) * 0.05

    # feature_block: L x [Conv2d(C, C, 1) + BN + ReLU]
    wfb_t = jax.random.normal(keys[2], (L, C, C, 1, 1), jnp.float32) * 0.1
    wfb_t = jnp.stack([spectral_normalize(wfb_t[l]) for l in range(L)])
    wfb = wfb_t[:, :, :, 0, 0]                   # (L, C_out, C_in)
    bfb = (jax.random.normal(keys[3], (L, C), jnp.float32) * 0.05)[..., None]  # (L, C, 1)
    gam = jnp.ones((L, C, 1), jnp.float32)       # BN default weight
    bet = jnp.zeros((L, C, 1), jnp.float32)      # BN default bias

    # final_layer: Conv2d(C, 1, 1) + Sigmoid
    wf_t = spectral_normalize(
        jax.random.normal(keys[4], (1, C, 1, 1), jnp.float32) * 0.1)
    wf = wf_t[:, :, 0, 0]                        # (1, C)
    bf = jax.random.normal(keys[5], (1, 1), jnp.float32) * 0.05

    return (w1, b1, wfb, bfb, gam, bet, wf, bf)


if __name__ == "__main__":
    # conf: D_chan=32, D_kernel_size=3, D_n_layers=4 (=> 2 feature-block layers),
    # input_crop_size=18 -> first conv output is 16x16 (M = 2*16*16 = 512 lanes).
    N, H = 2, 18
    D_chan, D_kernel_size, D_n_layers = 32, 3, 4
    L = D_n_layers - 2

    key = jax.random.PRNGKey(0)
    kx, kp = jax.random.split(key)
    x = jax.random.normal(kx, (N, 1, H, H), jnp.float32)    # NCHW like PyTorch
    params = init_params(kp, D_chan, D_kernel_size, L)

    out = discriminator_forward(x, params)
    out = jax.block_until_ready(out)

    Ho = H - D_kernel_size + 1
    assert out.shape == (N, 1, Ho, Ho), out.shape
    assert bool(jnp.all(jnp.isfinite(out)))
    assert bool(jnp.all((out >= 0.0) & (out <= 1.0)))       # sigmoid range
    # TODO(synk): `forward_shave` (computed in __init__) equals
    # input_crop_size - output spatial size = D_kernel_size - 1; not part of forward.
    print("KERNEL_OK")
</pallas_src>

<mosaic_0001>
module attributes {stable_mosaic.version = 11 : i64} {
  func.func @discriminator_kernel(%arg0: memref<9x512xf32, #tpu.memory_space<vmem>>, %arg1: memref<32x9xbf16, #tpu.memory_space<vmem>>, %arg2: memref<32x1xf32, #tpu.memory_space<vmem>>, %arg3: memref<2x32x32xbf16, #tpu.memory_space<vmem>>, %arg4: memref<2x32x1xf32, #tpu.memory_space<vmem>>, %arg5: memref<2x32x1xf32, #tpu.memory_space<vmem>>, %arg6: memref<2x32x1xf32, #tpu.memory_space<vmem>>, %arg7: memref<1x32xbf16, #tpu.memory_space<vmem>>, %arg8: memref<1x1xf32, #tpu.memory_space<vmem>>, %arg9: memref<1x512xf32, #tpu.memory_space<vmem>>) attributes {dimension_semantics = [], scalar_prefetch = 0 : i64, scratch_operands = 0 : i64, tpu.core_type = #tpu.core_type<tc>} {
    %c0 = arith.constant 0 : index
    %c0_0 = arith.constant 0 : index
    %0 = vector.load %arg1[%c0, %c0_0] : memref<32x9xbf16, #tpu.memory_space<vmem>>, vector<32x9xbf16>
    %c0_1 = arith.constant 0 : index
    %c0_2 = arith.constant 0 : index
    %1 = vector.load %arg0[%c0_1, %c0_2] : memref<9x512xf32, #tpu.memory_space<vmem>>, vector<9x512xf32>
    %2 = arith.truncf %1 : vector<9x512xf32> to vector<9x512xbf16>
    %cst = arith.constant dense<0.000000e+00> : vector<32x512xf32>
    %3 = tpu.matmul %0, %2, %cst {dimension_numbers = #tpu.dot_dimension_numbers<[1], [0], [0], [1], [0, 0, 1, 1], [], []>} : vector<32x9xbf16>, vector<9x512xbf16>, vector<32x512xf32> -> vector<32x512xf32>
    %c0_3 = arith.constant 0 : index
    %c0_4 = arith.constant 0 : index
    %4 = vector.load %arg2[%c0_3, %c0_4] : memref<32x1xf32, #tpu.memory_space<vmem>>, vector<32x1xf32>
    %5 = vector.broadcast %4 : vector<32x1xf32> to vector<32x512xf32>
    %6 = arith.addf %3, %5 : vector<32x512xf32>
    %c0_5 = arith.constant 0 : index
    %c0_6 = arith.constant 0 : index
    %c0_7 = arith.constant 0 : index
    %7 = vector.load %arg3[%c0_5, %c0_6, %c0_7] : memref<2x32x32xbf16, #tpu.memory_space<vmem>>, vector<1x32x32xbf16>
    %8 = vector.shape_cast %7 : vector<1x32x32xbf16> to vector<32x32xbf16>
    %9 = arith.truncf %6 : vector<32x512xf32> to vector<32x512xbf16>
    %cst_8 = arith.constant dense<0.000000e+00> : vector<32x512xf32>
    %10 = tpu.matmul %8, %9, %cst_8 {dimension_numbers = #tpu.dot_dimension_numbers<[1], [0], [0], [1], [0, 0, 1, 1], [], []>} : vector<32x32xbf16>, vector<32x512xbf16>, vector<32x512xf32> -> vector<32x512xf32>
    %c0_9 = arith.constant 0 : index
    %c0_10 = arith.constant 0 : index
    %c0_11 = arith.constant 0 : index
    %11 = vector.load %arg4[%c0_9, %c0_10, %c0_11] : memref<2x32x1xf32, #tpu.memory_space<vmem>>, vector<1x32x1xf32>
    %12 = vector.shape_cast %11 : vector<1x32x1xf32> to vector<32x1xf32>
    %13 = vector.broadcast %12 : vector<32x1xf32> to vector<32x512xf32>
    %14 = arith.addf %10, %13 : vector<32x512xf32>
    %15 = arith.mulf %14, %14 : vector<32x512xf32>
    %16 = tpu.concatenate %14, %15 in 0 : vector<32x512xf32>, vector<32x512xf32> -> vector<64x512xf32>
    %cst_12 = arith.constant dense<0.000000e+00> : vector<64xf32>
    %17 = vector.multi_reduction <add>, %16, %cst_12 [1] : vector<64x512xf32> to vector<64xf32>
    %18 = vector.shape_cast %17 : vector<64xf32> to vector<64x1xf32>
    %cst_13 = arith.constant 0.001953125 : f32
    %19 = vector.broadcast %cst_13 : f32 to vector<64x1xf32>
    %20 = arith.mulf %18, %19 : vector<64x1xf32>
    %21 = vector.extract_strided_slice %20 {offsets = [0, 0], sizes = [32, 1], strides = [1, 1]} : vector<64x1xf32> to vector<32x1xf32>
    %22 = vector.extract_strided_slice %20 {offsets = [32, 0], sizes = [32, 1], strides = [1, 1]} : vector<64x1xf32> to vector<32x1xf32>
    %23 = arith.mulf %21, %21 : vector<32x1xf32>
    %24 = arith.subf %22, %23 : vector<32x1xf32>
    %cst_14 = arith.constant 9.99999974E-6 : f32
    %25 = vector.broadcast %cst_14 : f32 to vector<32x1xf32>
    %26 = arith.addf %24, %25 : vector<32x1xf32>
    %27 = math.rsqrt %26 : vector<32x1xf32>
    %c0_15 = arith.constant 0 : index
    %c0_16 = arith.constant 0 : index
    %c0_17 = arith.constant 0 : index
    %28 = vector.load %arg5[%c0_15, %c0_16, %c0_17] : memref<2x32x1xf32, #tpu.memory_space<vmem>>, vector<1x32x1xf32>
    %29 = vector.shape_cast %28 : vector<1x32x1xf32> to vector<32x1xf32>
    %30 = arith.mulf %27, %29 : vector<32x1xf32>
    %c0_18 = arith.constant 0 : index
    %c0_19 = arith.constant 0 : index
    %c0_20 = arith.constant 0 : index
    %31 = vector.load %arg6[%c0_18, %c0_19, %c0_20] : memref<2x32x1xf32, #tpu.memory_space<vmem>>, vector<1x32x1xf32>
    %32 = vector.shape_cast %31 : vector<1x32x1xf32> to vector<32x1xf32>
    %33 = arith.mulf %21, %30 : vector<32x1xf32>
    %34 = arith.subf %32, %33 : vector<32x1xf32>
    %35 = vector.broadcast %30 : vector<32x1xf32> to vector<32x512xf32>
    %36 = arith.mulf %14, %35 : vector<32x512xf32>
    %37 = vector.broadcast %34 : vector<32x1xf32> to vector<32x512xf32>
    %38 = arith.addf %36, %37 : vector<32x512xf32>
    %cst_21 = arith.constant 0.000000e+00 : f32
    %39 = vector.broadcast %cst_21 : f32 to vector<32x512xf32>
    %40 = arith.maximumf %38, %39 : vector<32x512xf32>
    %c1 = arith.constant 1 : index
    %c0_22 = arith.constant 0 : index
    %c0_23 = arith.constant 0 : index
    %41 = vector.load %arg3[%c1, %c0_22, %c0_23] : memref<2x32x32xbf16, #tpu.memory_space<vmem>>, vector<1x32x32xbf16>
    %42 = vector.shape_cast %41 : vector<1x32x32xbf16> to vector<32x32xbf16>
    %43 = arith.truncf %40 : vector<32x512xf32> to vector<32x512xbf16>
    %cst_24 = arith.constant dense<0.000000e+00> : vector<32x512xf32>
    %44 = tpu.matmul %42, %43, %cst_24 {dimension_numbers = #tpu.dot_dimension_numbers<[1], [0], [0], [1], [0, 0, 1, 1], [], []>} : vector<32x32xbf16>, vector<32x512xbf16>, vector<32x512xf32> -> vector<32x512xf32>
    %c1_25 = arith.constant 1 : index
    %c0_26 = arith.constant 0 : index
    %c0_27 = arith.constant 0 : index
    %45 = vector.load %arg4[%c1_25, %c0_26, %c0_27] : memref<2x32x1xf32, #tpu.memory_space<vmem>>, vector<1x32x1xf32>
    %46 = vector.shape_cast %45 : vector<1x32x1xf32> to vector<32x1xf32>
    %47 = vector.broadcast %46 : vector<32x1xf32> to vector<32x512xf32>
    %48 = arith.addf %44, %47 : vector<32x512xf32>
    %49 = arith.mulf %48, %48 : vector<32x512xf32>
    %50 = tpu.concatenate %48, %49 in 0 : vector<32x512xf32>, vector<32x512xf32> -> vector<64x512xf32>
    %cst_28 = arith.constant dense<0.000000e+00> : vector<64xf32>
    %51 = vector.multi_reduction <add>, %50, %cst_28 [1] : vector<64x512xf32> to vector<64xf32>
    %52 = vector.shape_cast %51 : vector<64xf32> to vector<64x1xf32>
    %cst_29 = arith.constant 0.001953125 : f32
    %53 = vector.broadcast %cst_29 : f32 to vector<64x1xf32>
    %54 = arith.mulf %52, %53 : vector<64x1xf32>
    %55 = vector.extract_strided_slice %54 {offsets = [0, 0], sizes = [32, 1], strides = [1, 1]} : vector<64x1xf32> to vector<32x1xf32>
    %56 = vector.extract_strided_slice %54 {offsets = [32, 0], sizes = [32, 1], strides = [1, 1]} : vector<64x1xf32> to vector<32x1xf32>
    %57 = arith.mulf %55, %55 : vector<32x1xf32>
    %58 = arith.subf %56, %57 : vector<32x1xf32>
    %cst_30 = arith.constant 9.99999974E-6 : f32
    %59 = vector.broadcast %cst_30 : f32 to vector<32x1xf32>
    %60 = arith.addf %58, %59 : vector<32x1xf32>
    %61 = math.rsqrt %60 : vector<32x1xf32>
    %c1_31 = arith.constant 1 : index
    %c0_32 = arith.constant 0 : index
    %c0_33 = arith.constant 0 : index
    %62 = vector.load %arg5[%c1_31, %c0_32, %c0_33] : memref<2x32x1xf32, #tpu.memory_space<vmem>>, vector<1x32x1xf32>
    %63 = vector.shape_cast %62 : vector<1x32x1xf32> to vector<32x1xf32>
    %64 = arith.mulf %61, %63 : vector<32x1xf32>
    %c1_34 = arith.constant 1 : index
    %c0_35 = arith.constant 0 : index
    %c0_36 = arith.constant 0 : index
    %65 = vector.load %arg6[%c1_34, %c0_35, %c0_36] : memref<2x32x1xf32, #tpu.memory_space<vmem>>, vector<1x32x1xf32>
    %66 = vector.shape_cast %65 : vector<1x32x1xf32> to vector<32x1xf32>
    %67 = arith.mulf %55, %64 : vector<32x1xf32>
    %68 = arith.subf %66, %67 : vector<32x1xf32>
    %69 = vector.broadcast %64 : vector<32x1xf32> to vector<32x512xf32>
    %70 = arith.mulf %48, %69 : vector<32x512xf32>
    %71 = vector.broadcast %68 : vector<32x1xf32> to vector<32x512xf32>
    %72 = arith.addf %70, %71 : vector<32x512xf32>
    %cst_37 = arith.constant 0.000000e+00 : f32
    %73 = vector.broadcast %cst_37 : f32 to vector<32x512xf32>
    %74 = arith.maximumf %72, %73 : vector<32x512xf32>
    %c0_38 = arith.constant 0 : index
    %c0_39 = arith.constant 0 : index
    %75 = vector.load %arg7[%c0_38, %c0_39] : memref<1x32xbf16, #tpu.memory_space<vmem>>, vector<1x32xbf16>
    %76 = arith.truncf %74 : vector<32x512xf32> to vector<32x512xbf16>
    %cst_40 = arith.constant dense<0.000000e+00> : vector<1x512xf32>
    %77 = tpu.matmul %75, %76, %cst_40 {dimension_numbers = #tpu.dot_dimension_numbers<[1], [0], [0], [1], [0, 0, 1, 1], [], []>} : vector<1x32xbf16>, vector<32x512xbf16>, vector<1x512xf32> -> vector<1x512xf32>
    %c0_41 = arith.constant 0 : index
    %c0_42 = arith.constant 0 : index
    %78 = vector.load %arg8[%c0_41, %c0_42] : memref<1x1xf32, #tpu.memory_space<vmem>>, vector<1x1xf32>
    %79 = vector.broadcast %78 : vector<1x1xf32> to vector<1x512xf32>
    %80 = arith.addf %77, %79 : vector<1x512xf32>
    %81 = arith.negf %80 : vector<1x512xf32>
    %82 = math.exp %81 : vector<1x512xf32>
    %cst_43 = arith.constant 1.000000e+00 : f32
    %83 = vector.broadcast %cst_43 : f32 to vector<1x512xf32>
    %84 = arith.addf %83, %82 : vector<1x512xf32>
    %85 = arith.divf %83, %84 : vector<1x512xf32>
    %c0_44 = arith.constant 0 : index
    %c0_45 = arith.constant 0 : index
    %86 = vector.load %arg9[%c0_44, %c0_45] : memref<1x512xf32, #tpu.memory_space<vmem>>, vector<1x512xf32>
    tpu.vector_store %arg9[%c0_44, %c0_45], %85 {strides = array<i32>} : memref<1x512xf32, #tpu.memory_space<vmem>>, vector<1x512xf32>,
    return
  }
}

</mosaic_0001>

<bundles_post_ra>
// kernel: discriminator_forward.1
= control target key start
LH: loop header
LB: loop body
LE: loop exit
PB: predicated region body
PF: predicated region fallthrough
CT: control target
= control target key end

     0   :  { %vm92_vm0 = vcmask 1043456   ;;  %vm93_vm1 = vcmask 1044480   ;;  %v1178_v2 = vmov 65535   ;;  %v1179_v10 = vmov 0   ;;  %s1649_s0 = inlined_call_operand.vmem [shape: f32[9,512], index: 0, kind: input, shape index: {}]   ;;  %s1650_s2 = inlined_call_operand.vmem [shape: f32[32,1], index: 2, kind: input, shape index: {}]   ;;  %s1651_s1 = inlined_call_operand.vmem [shape: bf16[32,9], index: 1, kind: input, shape index: {}]   ;;  %s1652_s4 = inlined_call_operand.vmem [shape: f32[2,32,1], index: 4, kind: input, shape index: {}]   ;;  %s1653_s3 = inlined_call_operand.vmem [shape: bf16[2,32,32], index: 3, kind: input, shape index: {}]   ;;  %s1654_s5 = inlined_call_operand.vmem [shape: f32[2,32,1], index: 5, kind: input, shape index: {}]   ;;  %s1655_s6 = inlined_call_operand.vmem [shape: f32[2,32,1], index: 6, kind: input, shape index: {}]   ;;  %s1656_s8 = inlined_call_operand.<no memory space> [shape: f32[1,1], index: 8, kind: input, shape index: {}]   ;;  %s1657_s7 = inlined_call_operand.vmem [shape: bf16[1,32], index: 7, kind: input, shape index: {}]   ;;  %s1658_s9 = inlined_call_operand.vmem [shape: f32[1,512], index: 9, kind: output, shape index: {}]  }
   0x1   :  { %v39_v0 = vld [vmem:[%s1649_s0] sm:$0xff]  ;;  %v94_v3 = vsel %vm92_vm0, 4294967295, %v1178_v2  ;;  %v40_v4 = vld [vmem:[%s1649_s0 + $0x8] sm:$0xff]  ;;  %v41_v8 = vld [vmem:[%s1649_s0 + $0x10] sm:$0xff]  ;;  %1144 = vset.pattern.permute.xlu1 %v1179_v10  ;;  %1143 = vset.pattern.permute.xlu0 %v1179_v10  ;;  %vm85_vm2 = vcmask 72704   ;;  %vm230_vm3 = vcmask 261120  }
   0x2   :  { %v43_v1 = vld [vmem:[%s1649_s0 + $0x20] sm:$0x1]  ;;  %v95_v6 = vsel %vm93_vm1, %v94_v3, 0  ;;  %v44_v7 = vld [vmem:[%s1649_s0 + $0x28] sm:$0x1]  ;;  %v42_v13 = vld [vmem:[%s1649_s0 + $0x18] sm:$0xff]  ;;  %1145 = vset.pattern.permute.xlu2 %v1179_v10 }
   0x3   :  { %v47_v5 = vpack.c.bf16 %v43_v1, %v39_v0  ;;  %v45_v9 = vld [vmem:[%s1649_s0 + $0x30] sm:$0x1]  ;;  %v48_v11 = vpack.c.bf16 %v44_v7, %v40_v4  ;;  %v46_v14 = vld [vmem:[%s1649_s0 + $0x38] sm:$0x1]  ;;  %v51_v17 = vld [vmem:[%s1650_s2] sm:$0xff] }
   0x4   :  { %v49_v12 = vpack.c.bf16 %v45_v9, %v41_v8  ;;  %v50_v16 = vpack.c.bf16 %v46_v14, %v42_v13  ;;  %v53_v18 = vld [vmem:[%s1650_s2 + $0x10] sm:$0xff]  ;;  %v1135_v21 = vld [vmem:[%s1651_s1] sm:$0xff]  ;;  %57 = vperm.xlu1 %1144, %v51_v17   ;;  %v52_v23 = vld [vmem:[%s1650_s2 + $0x8] sm:$0xff] }
   0x5   :  { %v97_v15 = vand.u32 %v95_v6, %v47_v5  ;;  %v100_v19 = vand.u32 %v95_v6, %v48_v11  ;;  %67 = vperm.xlu0 %1143, %v53_v18   ;;  %v54_v24 = vld [vmem:[%s1650_s2 + $0x18] sm:$0xff]  ;;  %v196_v25 = vld [vmem:[%s1652_s4] sm:$0xff]  ;;  %v197_v26 = vld [vmem:[%s1652_s4 + $0x8] sm:$0xff] }
   0x6   :  { %v103_v20 = vand.u32 %v95_v6, %v49_v12  ;;  %v106_v22 = vand.u32 %v95_v6, %v50_v16  ;;  %v1136_v27 = vld [vmem:[%s1651_s1 + $0x8] sm:$0xff]  ;;  %v198_v56 = vld [vmem:[%s1652_s4 + $0x10] sm:$0xff]  ;;  %v1137_v63 = vld [vmem:[%s1653_s3] sm:$0xff] }
   0x7   :  { %115 = vmatpush.bf16.msra.mxu0 %v97_v15  ;;  %134 = vmatpush.bf16.msra.mxu1 %v100_v19  ;;  %v199_v6 = vld [vmem:[%s1652_s4 + $0x18] sm:$0xff]  ;;  %v1138_v11 = vld [vmem:[%s1653_s3 + $0x8] sm:$0xff] }
   0x8   :  { %153 = vmatpush.bf16.msra.mxu2 %v103_v20  ;;  %172 = vmatpush.bf16.msra.mxu3 %v106_v22 }
   0x9   :  { %212 = vperm.xlu2 %1145, %v198_v56  }
   0xa   :  { %1071 = vmatmul.msk.bf16.vlgmr.msra.gmra.mxu0 %vm85_vm2, %v1135_v21  ;;  %1073 = vmatmul.msk.bf16.vlgmr.msra.gmra.mxu1 %vm85_vm2, %v1135_v21 }
   0xb   :  { %1075 = vmatmul.msk.bf16.vlgmr.msra.gmra.mxu2 %vm85_vm2, %v1135_v21  ;;  %1077 = vmatmul.msk.bf16.vlgmr.msra.gmra.mxu3 %vm85_vm2, %v1135_v21 }
   0xc   :  { %62 = vperm.xlu1 %1144, %v52_v23  }
   0xd   :  { %72 = vperm.xlu0 %1143, %v54_v24  }
  0x11   :  { %217 = vperm.xlu2 %1145, %v199_v6  }
  0x14   :  { %207 = vperm.xlu1 %1144, %v197_v26  }
  0x15   :  { %202 = vperm.xlu0 %1143, %v196_v25  }
  0x1a   :  { %1072 = vmatmul.msk.bf16.gmra.mxu0 %vm85_vm2, %v1136_v27  ;;  %1074 = vmatmul.msk.bf16.gmra.mxu1 %vm85_vm2, %v1136_v27 }
  0x1b   :  { %1076 = vmatmul.msk.bf16.gmra.mxu2 %vm85_vm2, %v1136_v27  ;;  %1078 = vmatmul.msk.bf16.gmra.mxu3 %vm85_vm2, %v1136_v27 }
  0x63   :  { %v213_v26 = vpop.permute.xlu2 %212 }
  0x76   :  { %v58_v34 = vpop.permute.xlu1 %57 }
  0x77   :  { %v68_v35 = vpop.permute.xlu0 %67 }
  0x7e   :  { %v63_v40 = vpop.permute.xlu1 %62 }
  0x7f   :  { %v73_v41 = vpop.permute.xlu0 %72 }
  0x87   :  { %v117_v28 = vpop.f32.mrf.mxu0  ;;  %v136_v29 = vpop.f32.mrf.mxu1 }
  0x88   :  { %v118_v51 = vadd.f32 %v117_v28, %v58_v34  ;;  %v137_v54 = vadd.f32 %v136_v29, %v58_v34  ;;  %v203_v14 = vpop.permute.xlu0 %202 }
  0x8e   :  { %v155_v30 = vpop.f32.mrf.mxu2  ;;  %v174_v31 = vpop.f32.mrf.mxu3 }
  0x8f   :  { %v119_v32 = vpop.f32.mrf.mxu0  ;;  %v138_v33 = vpop.f32.mrf.mxu1  ;;  %v156_v7 = vadd.f32 %v155_v30, %v58_v34  ;;  %v175_v8 = vadd.f32 %v174_v31, %v58_v34 }
  0x90   :  { %v120_v52 = vadd.f32 %v119_v32, %v63_v40  ;;  %v139_v55 = vadd.f32 %v138_v33, %v63_v40 }
  0x92   :  { %v188_v58 = vpack.c.bf16 %v120_v52, %v118_v51  ;;  %v189_v62 = vpack.c.bf16 %v139_v55, %v137_v54  ;;  %v208_v54 = vpop.permute.xlu1 %207 }
  0x96   :  { %v157_v36 = vpop.f32.mrf.mxu2  ;;  %v176_v37 = vpop.f32.mrf.mxu3 }
  0x97   :  { %v122_v38 = vpop.f32.mrf.mxu0  ;;  %v141_v39 = vpop.f32.mrf.mxu1  ;;  %v158_v2 = vadd.f32 %v157_v36, %v63_v40  ;;  %v177_v4 = vadd.f32 %v176_v37, %v63_v40 }
  0x98   :  { %v123_v45 = vadd.f32 %v122_v38, %v68_v35  ;;  %v142_v48 = vadd.f32 %v141_v39, %v68_v35  ;;  %v218_v36 = vpop.permute.xlu2 %217 }
  0x99   :  { %v190_v9 = vpack.c.bf16 %v158_v2, %v156_v7  ;;  %v191_v10 = vpack.c.bf16 %v177_v4, %v175_v8 }
  0x9e   :  { %v160_v42 = vpop.f32.mrf.mxu2  ;;  %v179_v43 = vpop.f32.mrf.mxu3 }
  0x9f   :  { %v124_v44 = vpop.f32.mrf.mxu0  ;;  %v143_v47 = vpop.f32.mrf.mxu1  ;;  %v161_v59 = vadd.f32 %v160_v42, %v68_v35  ;;  %v180_v0 = vadd.f32 %v179_v43, %v68_v35 }
  0xa0   :  { %v125_v46 = vadd.f32 %v124_v44, %v73_v41  ;;  %v144_v49 = vadd.f32 %v143_v47, %v73_v41 }
  0xa2   :  { %v192_v50 = vpack.c.bf16 %v125_v46, %v123_v45  ;;  %v193_v53 = vpack.c.bf16 %v144_v49, %v142_v48 }
  0xa4   :  { %243 = vmatpush.bf16.msrb.mxu0 %v192_v50  ;;  %262 = vmatpush.bf16.msrb.mxu1 %v193_v53 }
  0xa6   :  { %v162_v57 = vpop.f32.mrf.mxu2  ;;  %v181_v61 = vpop.f32.mrf.mxu3 }
  0xa7   :  { %v163_v60 = vadd.f32 %v162_v57, %v73_v41  ;;  %v182_v1 = vadd.f32 %v181_v61, %v73_v41 }
  0xa8   :  { %244 = vmatpush.bf16.msrb.mxu0 %v188_v58  ;;  %263 = vmatpush.bf16.msrb.mxu1 %v189_v62 }
  0xa9   :  { %v194_v3 = vpack.c.bf16 %v163_v60, %v161_v59  ;;  %v195_v5 = vpack.c.bf16 %v182_v1, %v180_v0 }
  0xab   :  { %281 = vmatpush.bf16.msrb.mxu2 %v194_v3  ;;  %1087 = vmatmul.msk.bf16.vlgmr.msrb.gmra.mxu0 %vm230_vm3, %v1137_v63 }
  0xac   :  { %300 = vmatpush.bf16.msrb.mxu3 %v195_v5  ;;  %1089 = vmatmul.msk.bf16.vlgmr.msrb.gmra.mxu1 %vm230_vm3, %v1137_v63 }
  0xaf   :  { %282 = vmatpush.bf16.msrb.mxu2 %v190_v9 }
  0xb0   :  { %301 = vmatpush.bf16.msrb.mxu3 %v191_v10 }
  0xb2   :  { %1091 = vmatmul.msk.bf16.vlgmr.msrb.gmra.mxu2 %vm230_vm3, %v1137_v63 }
  0xb3   :  { %1093 = vmatmul.msk.bf16.vlgmr.msrb.gmra.mxu3 %vm230_vm3, %v1137_v63 }
  0xbb   :  { %1088 = vmatmul.msk.bf16.gmra.mxu0 %vm230_vm3, %v1138_v11 }
  0xbc   :  { %1090 = vmatmul.msk.bf16.gmra.mxu1 %vm230_vm3, %v1138_v11 }
  0xc2   :  { %1092 = vmatmul.msk.bf16.gmra.mxu2 %vm230_vm3, %v1138_v11 }
  0xc3   :  { %1094 = vmatmul.msk.bf16.gmra.mxu3 %vm230_vm3, %v1138_v11 }
 0x128   :  { %v246_v12 = vpop.f32.mrf.mxu0 }
 0x129   :  { %v265_v13 = vpop.f32.mrf.mxu1  ;;  %v1306_v15 = vadd.f32 %v246_v12, %v203_v14 }
 0x12a   :  { %v1308_v16 = vadd.f32 %v265_v13, %v203_v14 }
 0x12b   :  { %v313_v48 = vmul.f32 %v1306_v15, %v1306_v15 }
 0x12c   :  { %v329_v20 = vadd.f32 %v1308_v16, %v1306_v15  ;;  %v314_v49 = vmul.f32 %v1308_v16, %v1308_v16 }
 0x12e   :  { %v349_v61 = vadd.f32 %v314_v49, %v313_v48 }
 0x130   :  { %v248_v17 = vpop.f32.mrf.mxu0 }
 0x131   :  { %v267_v18 = vpop.f32.mrf.mxu1  ;;  %v1352_v58 = vadd.f32 %v248_v17, %v208_v54 }
 0x132   :  { %v1354_v59 = vadd.f32 %v267_v18, %v208_v54 }
 0x133   :  { %v317_v7 = vmul.f32 %v1352_v58, %v1352_v58 }
 0x134   :  { %v318_v8 = vmul.f32 %v1354_v59, %v1354_v59  ;;  %v334_v13 = vadd.f32 %v1354_v59, %v1352_v58 }
 0x135   :  { %v284_v19 = vpop.f32.mrf.mxu2 }
 0x136   :  { %v1312_v21 = vadd.f32 %v284_v19, %v203_v14  ;;  %v303_v22 = vpop.f32.mrf.mxu3 }
 0x137   :  { %v1314_v23 = vadd.f32 %v303_v22, %v203_v14  ;;  %v354_v22 = vadd.f32 %v318_v8, %v317_v7 }
 0x138   :  { %v330_v24 = vadd.f32 %v329_v20, %v1312_v21  ;;  %v251_v27 = vpop.f32.mrf.mxu0  ;;  %v315_v53 = vmul.f32 %v1312_v21, %v1312_v21 }
 0x139   :  { %v270_v28 = vpop.f32.mrf.mxu1  ;;  %v1318_v30 = vadd.f32 %v251_v27, %v213_v26  ;;  %v316_v12 = vmul.f32 %v1314_v23, %v1314_v23 }
 0x13a   :  { %v331_v25 = vadd.f32 %v330_v24, %v1314_v23  ;;  %v1320_v31 = vadd.f32 %v270_v28, %v213_v26  ;;  %v350_v2 = vadd.f32 %v349_v61, %v315_v53 }
 0x13b   :  { %v321_v33 = vmul.f32 %v1318_v30, %v1318_v30 }
 0x13c   :  { %332 = vadd.xlane.f32.xlu2 %v331_v25  ;;  %v322_v34 = vmul.f32 %v1320_v31, %v1320_v31  ;;  %v339_v35 = vadd.f32 %v1320_v31, %v1318_v30  ;;  %v351_v18 = vadd.f32 %v350_v2, %v316_v12  ;;  %v431_v12 = vld [vmem:[%s1654_s5 + $0x10] sm:$0xff] }
 0x13d   :  { %v286_v29 = vpop.f32.mrf.mxu2 }
 0x13e   :  { %v305_v32 = vpop.f32.mrf.mxu3  ;;  %v359_v42 = vadd.f32 %v322_v34, %v321_v33  ;;  %v1362_v3 = vadd.f32 %v286_v29, %v208_v54 }
 0x13f   :  { %v1380_v19 = vadd.f32 %v305_v32, %v208_v54 }
 0x140   :  { %v253_v37 = vpop.f32.mrf.mxu0  ;;  %v319_v14 = vmul.f32 %v1362_v3, %v1362_v3  ;;  %v335_v20 = vadd.f32 %v334_v13, %v1362_v3 }
 0x141   :  { %v272_v38 = vpop.f32.mrf.mxu1  ;;  %v1332_v44 = vadd.f32 %v253_v37, %v218_v36 }
 0x142   :  { %v1334_v45 = vadd.f32 %v272_v38, %v218_v36  ;;  %v355_v24 = vadd.f32 %v354_v22, %v319_v14  ;;  %v336_v25 = vadd.f32 %v335_v20, %v1380_v19 }
 0x143   :  { %v325_v55 = vmul.f32 %v1332_v44, %v1332_v44 }
 0x144   :  { %v326_v56 = vmul.f32 %v1334_v45, %v1334_v45  ;;  %v344_v62 = vadd.f32 %v1334_v45, %v1332_v44 }
 0x145   :  { %v289_v39 = vpop.f32.mrf.mxu2 }
 0x146   :  { %v1328_v40 = vadd.f32 %v289_v39, %v213_v26  ;;  %v308_v41 = vpop.f32.mrf.mxu3  ;;  %v364_v6 = vadd.f32 %v326_v56, %v325_v55 }
 0x147   :  { %v1330_v43 = vadd.f32 %v308_v41, %v213_v26  ;;  %v320_v26 = vmul.f32 %v1380_v19, %v1380_v19 }
 0x148   :  { %v323_v46 = vmul.f32 %v1328_v40, %v1328_v40  ;;  %v340_v47 = vadd.f32 %v339_v35, %v1328_v40 }
 0x149   :  { %v324_v51 = vmul.f32 %v1330_v43, %v1330_v43  ;;  %v356_v27 = vadd.f32 %v355_v24, %v320_v26  ;;  %v439_v24 = vld [vmem:[%s1655_s6 + $0x10] sm:$0xff] }
 0x14a   :  { %v341_v50 = vadd.f32 %v340_v47, %v1330_v43  ;;  %v360_v52 = vadd.f32 %v359_v42, %v323_v46 }
 0x14c   :  { %342 = vadd.xlane.f32.xlu2 %v341_v50  ;;  %v361_v57 = vadd.f32 %v360_v52, %v324_v51 }
 0x14d   :  { %v291_v60 = vpop.f32.mrf.mxu2 }
 0x14e   :  { %v1358_v63 = vadd.f32 %v291_v60, %v218_v36  ;;  %v310_v0 = vpop.f32.mrf.mxu3  ;;  %362 = vadd.xlane.f32.xlu1 %v361_v57 }
 0x14f   :  { %v1360_v1 = vadd.f32 %v310_v0, %v218_v36 }
 0x150   :  { %v327_v4 = vmul.f32 %v1358_v63, %v1358_v63  ;;  %v345_v5 = vadd.f32 %v344_v62, %v1358_v63 }
 0x151   :  { %v328_v10 = vmul.f32 %v1360_v1, %v1360_v1 }
 0x152   :  { %v346_v9 = vadd.f32 %v345_v5, %v1360_v1  ;;  %v365_v11 = vadd.f32 %v364_v6, %v327_v4 }
 0x154   :  { %347 = vadd.xlane.f32.xlu0 %v346_v9  ;;  %v366_v17 = vadd.f32 %v365_v11, %v328_v10 }
 0x156   :  { %367 = vadd.xlane.f32.xlu2 %v366_v17  ;;  %352 = vadd.xlane.f32.xlu1 %v351_v18 }
 0x15c   :  { %337 = vadd.xlane.f32.xlu0 %v336_v25 }
 0x15e   :  { %357 = vadd.xlane.f32.xlu2 %v356_v27 }
 0x1af   :  { %v333_v28 = vpop.xlane.xlu2 %332 }
 0x1b0   :  { %v1386_v37 = vmul.f32 0.001953125, %v333_v28 }
 0x1b2   :  { %v377_v47 = vmul.f32 %v1386_v37, %v1386_v37 }
 0x1bf   :  { %v343_v29 = vpop.xlane.xlu2 %342 }
 0x1c0   :  { %v371_v33 = vmul.f32 0.001953125, %v343_v29 }
 0x1c1   :  { %v363_v34 = vpop.xlane.xlu1 %362 }
 0x1c2   :  { %v379_v32 = vmul.f32 %v371_v33, %v371_v33  ;;  %v375_v35 = vmul.f32 0.001953125, %v363_v34 }
 0x1c4   :  { %v383_v36 = vsub.f32 %v375_v35, %v379_v32 }
 0x1c6   :  { %v387_v38 = vadd.f32 1e-05, %v383_v36  ;;  %v432_v36 = vld [vmem:[%s1654_s5 + $0x18] sm:$0xff] }
 0x1c7   :  { %v348_v39 = vpop.xlane.xlu0 %347 }
 0x1c8   :  { %1146 = vrsqrt.f32 %v387_v38  ;;  %v1388_v41 = vmul.f32 0.001953125, %v348_v39  ;;  %vm415_vm5 = vweird.f32 %v387_v38 }
 0x1c9   :  { %v368_v42 = vpop.xlane.xlu2 %367  ;;  %v353_v46 = vpop.xlane.xlu1 %352 }
 0x1ca   :  { %v380_v48 = vmul.f32 %v1388_v41, %v1388_v41  ;;  %v376_v49 = vmul.f32 0.001953125, %v368_v42  ;;  %v373_v50 = vmul.f32 0.001953125, %v353_v46 }
 0x1cc   :  { %v384_v51 = vsub.f32 %v376_v49, %v380_v48  ;;  %v381_v52 = vsub.f32 %v373_v50, %v377_v47  ;;  %v440_v50 = vld [vmem:[%s1655_s6 + $0x18] sm:$0xff] }
 0x1ce   :  { %v1147_v53 = vpop.eup %1146  ;;  %v388_v54 = vadd.f32 1e-05, %v384_v51  ;;  %v385_v55 = vadd.f32 1e-05, %v381_v52  ;;  %v437_v52 = vld [vmem:[%s1655_s6] sm:$0xff] }
 0x1cf   :  { %v410_v56 = vmul.f32 %v1147_v53, %v387_v38  ;;  %v338_v57 = vpop.xlane.xlu0 %337  ;;  %vm416_vm4 = vweird.f32 %v1147_v53 }
 0x1d0   :  { %1148 = vrsqrt.f32 %v388_v54  ;;  %v1394_v60 = vmul.f32 0.001953125, %v338_v57  ;;  %vm417_vm6 = vmor %vm415_vm5, %vm416_vm4  ;;  %vm425_vm9 = vweird.f32 %v388_v54  ;;  %vm395_vm11 = vweird.f32 %v385_v55 }
 0x1d1   :  { %v411_v61 = vmul.f32 %v1147_v53, %v410_v56  ;;  %1150 = vrsqrt.f32 %v385_v55  ;;  %v358_v62 = vpop.xlane.xlu2 %357 }
 0x1d2   :  { %v378_v0 = vmul.f32 %v1394_v60, %v1394_v60  ;;  %v374_v2 = vmul.f32 0.001953125, %v358_v62 }
 0x1d3   :  { %v412_v4 = vmul.f32 0.5, %v411_v61  ;;  %v430_v61 = vld [vmem:[%s1654_s5 + $0x8] sm:$0xff] }
 0x1d4   :  { %v382_v5 = vsub.f32 %v374_v2, %v378_v0  ;;  %v1102_v0 = vld [vmem:[%s1652_s4 + $0x38] sm:$0xff]  ;;  %v438_v2 = vld [vmem:[%s1655_s6 + $0x8] sm:$0xff] }
 0x1d5   :  { %v413_v6 = vsub.f32 1.5, %v412_v4 }
 0x1d6   :  { %v1149_v7 = vpop.eup %1148  ;;  %v386_v8 = vadd.f32 1e-05, %v382_v5  ;;  %v1101_v5 = vld [vmem:[%s1652_s4 + $0x30] sm:$0xff] }
 0x1d7   :  { %v1151_v9 = vpop.eup %1150  ;;  %v420_v10 = vmul.f32 %v1149_v7, %v388_v54  ;;  %v414_v11 = vmul.f32 %v1147_v53, %v413_v6  ;;  %vm426_vm7 = vweird.f32 %v1149_v7  ;;  %v1099_v6 = vld [vmem:[%s1652_s4 + $0x20] sm:$0xff] }
 0x1d8   :  { %v390_v13 = vmul.f32 %v1151_v9, %v385_v55  ;;  %1152 = vrsqrt.f32 %v386_v8  ;;  %vm396_vm8 = vweird.f32 %v1151_v9  ;;  %vm427_vm10 = vmor %vm425_vm9, %vm426_vm7  ;;  %vm405_vm14 = vweird.f32 %v386_v8 }
 0x1d9   :  { %v421_v14 = vmul.f32 %v1149_v7, %v420_v10  ;;  %v418_v17 = vsel %vm417_vm6, %v1147_v53, %v414_v11  ;;  %vm397_vm12 = vmor %vm395_vm11, %vm396_vm8 }
 0x1da   :  { %v391_v18 = vmul.f32 %v1151_v9, %v390_v13  ;;  %v435_v20 = vmul.f32 %v431_v12, %v418_v17 }
 0x1db   :  { %v422_v22 = vmul.f32 0.5, %v421_v14 }
 0x1dc   :  { %v392_v25 = vmul.f32 0.5, %v391_v18  ;;  %461 = vperm.xlu0 %1143, %v435_v20   ;;  %v443_v26 = vmul.f32 %v435_v20, %v371_v33  ;;  %v429_v33 = vld [vmem:[%s1654_s5] sm:$0xff] }
 0x1dd   :  { %v423_v27 = vsub.f32 1.5, %v422_v22 }
 0x1de   :  { %v1153_v28 = vpop.eup %1152  ;;  %v393_v29 = vsub.f32 1.5, %v392_v25  ;;  %v447_v34 = vsub.f32 %v439_v24, %v443_v26 }
 0x1df   :  { %v424_v32 = vmul.f32 %v1149_v7, %v423_v27  ;;  %v400_v35 = vmul.f32 %v1153_v28, %v386_v8  ;;  %vm406_vm13 = vweird.f32 %v1153_v28 }
 0x1e0   :  { %497 = vperm.xlu2 %1145, %v447_v34   ;;  %v394_v38 = vmul.f32 %v1151_v9, %v393_v29  ;;  %vm407_vm15 = vmor %vm405_vm14, %vm406_vm13 }
 0x1e1   :  { %v401_v39 = vmul.f32 %v1153_v28, %v400_v35  ;;  %v428_v42 = vsel %vm427_vm10, %v1149_v7, %v424_v32 }
 0x1e2   :  { %v398_v46 = vsel %vm397_vm12, %v1151_v9, %v394_v38  ;;  %v436_v47 = vmul.f32 %v432_v36, %v428_v42 }
 0x1e3   :  { %v402_v48 = vmul.f32 0.5, %v401_v39  ;;  %v433_v49 = vmul.f32 %v429_v33, %v398_v46 }
 0x1e4   :  { %v444_v51 = vmul.f32 %v436_v47, %v1388_v41 }
 0x1e5   :  { %v403_v53 = vsub.f32 1.5, %v402_v48  ;;  %451 = vperm.xlu1 %1144, %v433_v49   ;;  %v441_v54 = vmul.f32 %v433_v49, %v1386_v37 }
 0x1e6   :  { %v448_v55 = vsub.f32 %v440_v50, %v444_v51 }
 0x1e7   :  { %v445_v56 = vsub.f32 %v437_v52, %v441_v54  ;;  %v404_v57 = vmul.f32 %v1153_v28, %v403_v53 }
 0x1e8   :  { %502 = vperm.xlu0 %1143, %v448_v55  }
 0x1e9   :  { %487 = vperm.xlu2 %1145, %v445_v56   ;;  %v408_v41 = vsel %vm407_vm15, %v1153_v28, %v404_v57 }
 0x1ea   :  { %v434_v62 = vmul.f32 %v430_v61, %v408_v41 }
 0x1ec   :  { %v442_v37 = vmul.f32 %v434_v62, %v1394_v60  ;;  %v1100_v60 = vld [vmem:[%s1652_s4 + $0x28] sm:$0xff] }
 0x1ed   :  { %466 = vperm.xlu1 %1144, %v436_v47  }
 0x1ee   :  { %v446_v4 = vsub.f32 %v438_v2, %v442_v37 }
 0x1f0   :  { %456 = vperm.xlu0 %1143, %v434_v62  }
 0x1f1   :  { %572 = vperm.xlu2 %1145, %v1102_v0  }
 0x1f5   :  { %492 = vperm.xlu1 %1144, %v446_v4  }
 0x1f8   :  { %567 = vperm.xlu0 %1143, %v1101_v5  }
 0x1fd   :  { %557 = vperm.xlu1 %1144, %v1099_v6  }
 0x200   :  { %562 = vperm.xlu0 %1143, %v1100_v60  }
 0x23a   :  { %v498_v9 = vpop.permute.xlu2 %497 }
 0x24e   :  { %v462_v7 = vpop.permute.xlu0 %461 }
 0x24f   :  { %v477_v10 = vmul.f32 %v462_v7, %v1318_v30  ;;  %v478_v11 = vmul.f32 %v462_v7, %v1320_v31  ;;  %v479_v12 = vmul.f32 %v462_v7, %v1328_v40  ;;  %v480_v13 = vmul.f32 %v462_v7, %v1330_v43  ;;  %v1139_v7 = vld [vmem:[%s1653_s3 + $0x10] sm:$0xff] }
 0x251   :  { %v513_v17 = vadd.f32 %v498_v9, %v477_v10  ;;  %v514_v18 = vadd.f32 %v498_v9, %v478_v11  ;;  %v515_v20 = vadd.f32 %v498_v9, %v479_v12  ;;  %v516_v22 = vadd.f32 %v498_v9, %v480_v13 }
 0x253   :  { %v529_v29 = vmax.f32 %v513_v17, 0.0  ;;  %v530_v34 = vmax.f32 %v514_v18, 0.0  ;;  %v531_v32 = vmax.f32 %v515_v20, 0.0  ;;  %v532_v35 = vmax.f32 %v516_v22, 0.0 }
 0x257   :  { %v452_v8 = vpop.permute.xlu1 %451 }
 0x258   :  { %v469_v24 = vmul.f32 %v452_v8, %v1306_v15  ;;  %v470_v25 = vmul.f32 %v452_v8, %v1308_v16  ;;  %v471_v26 = vmul.f32 %v452_v8, %v1312_v21  ;;  %v472_v27 = vmul.f32 %v452_v8, %v1314_v23  ;;  %v488_v15 = vpop.permute.xlu2 %487  ;;  %v1140_v8 = vld [vmem:[%s1653_s3 + $0x18] sm:$0xff] }
 0x25a   :  { %v503_v14 = vpop.permute.xlu0 %502  ;;  %v505_v23 = vadd.f32 %v488_v15, %v469_v24  ;;  %v506_v39 = vadd.f32 %v488_v15, %v470_v25  ;;  %v507_v42 = vadd.f32 %v488_v15, %v471_v26 }
 0x25c   :  { %v521_v62 = vmax.f32 %v505_v23, 0.0  ;;  %v523_v0 = vmax.f32 %v507_v42, 0.0 }
 0x25f   :  { %v467_v30 = vpop.permute.xlu1 %466 }
 0x260   :  { %v481_v31 = vmul.f32 %v467_v30, %v1332_v44  ;;  %v482_v40 = vmul.f32 %v467_v30, %v1334_v45  ;;  %v483_v43 = vmul.f32 %v467_v30, %v1358_v63  ;;  %v484_v28 = vmul.f32 %v467_v30, %v1360_v1 }
 0x261   :  { %v508_v44 = vadd.f32 %v488_v15, %v472_v27 }
 0x262   :  { %v517_v36 = vadd.f32 %v503_v14, %v481_v31  ;;  %v518_v16 = vadd.f32 %v503_v14, %v482_v40  ;;  %v519_v38 = vadd.f32 %v503_v14, %v483_v43  ;;  %v520_v21 = vadd.f32 %v503_v14, %v484_v28  ;;  %v457_v33 = vpop.permute.xlu0 %456 }
 0x263   :  { %v473_v1 = vmul.f32 %v457_v33, %v1352_v58  ;;  %v474_v48 = vmul.f32 %v457_v33, %v1354_v59  ;;  %v475_v49 = vmul.f32 %v457_v33, %v1362_v3  ;;  %v476_v50 = vmul.f32 %v457_v33, %v1380_v19 }
 0x264   :  { %v533_v46 = vmax.f32 %v517_v36, 0.0  ;;  %v534_v45 = vmax.f32 %v518_v16, 0.0  ;;  %v535_v47 = vmax.f32 %v519_v38, 0.0  ;;  %v536_v63 = vmax.f32 %v520_v21, 0.0 }
 0x265   :  { %v522_v58 = vmax.f32 %v506_v39, 0.0  ;;  %v524_v59 = vmax.f32 %v508_v44, 0.0  ;;  %v573_v39 = vpop.permute.xlu2 %572 }
 0x266   :  { %v546_v51 = vpack.c.bf16 %v533_v46, %v529_v29  ;;  %v547_v52 = vpack.c.bf16 %v534_v45, %v530_v34  ;;  %v548_v53 = vpack.c.bf16 %v535_v47, %v531_v32  ;;  %v549_v54 = vpack.c.bf16 %v536_v63, %v532_v35 }
 0x267   :  { %v493_v55 = vpop.permute.xlu1 %492 }
 0x268   :  { %v509_v56 = vadd.f32 %v493_v55, %v473_v1  ;;  %v510_v57 = vadd.f32 %v493_v55, %v474_v48  ;;  %v511_v61 = vadd.f32 %v493_v55, %v475_v49  ;;  %v512_v41 = vadd.f32 %v493_v55, %v476_v50  ;;  %597 = vmatpush.bf16.msra.mxu0 %v546_v51 }
 0x269   :  { %616 = vmatpush.bf16.msra.mxu1 %v547_v52  ;;  %635 = vmatpush.bf16.msra.mxu2 %v548_v53 }
 0x26a   :  { %654 = vmatpush.bf16.msra.mxu3 %v549_v54  ;;  %v525_v3 = vmax.f32 %v509_v56, 0.0  ;;  %v526_v37 = vmax.f32 %v510_v57, 0.0  ;;  %v527_v19 = vmax.f32 %v511_v61, 0.0  ;;  %v528_v2 = vmax.f32 %v512_v41, 0.0  ;;  %v568_v30 = vpop.permute.xlu0 %567 }
 0x26c   :  { %v542_v4 = vpack.c.bf16 %v525_v3, %v521_v62  ;;  %v543_v5 = vpack.c.bf16 %v526_v37, %v522_v58  ;;  %v544_v6 = vpack.c.bf16 %v527_v19, %v523_v0  ;;  %v545_v60 = vpack.c.bf16 %v528_v2, %v524_v59 }
 0x26e   :  { %598 = vmatpush.bf16.msra.mxu0 %v542_v4  ;;  %617 = vmatpush.bf16.msra.mxu1 %v543_v5 }
 0x26f   :  { %636 = vmatpush.bf16.msra.mxu2 %v544_v6  ;;  %655 = vmatpush.bf16.msra.mxu3 %v545_v60  ;;  %v558_v11 = vpop.permute.xlu1 %557 }
 0x271   :  { %1111 = vmatmul.msk.bf16.vlgmr.msra.gmra.mxu0 %vm230_vm3, %v1139_v7  ;;  %1113 = vmatmul.msk.bf16.vlgmr.msra.gmra.mxu1 %vm230_vm3, %v1139_v7 }
 0x272   :  { %1115 = vmatmul.msk.bf16.vlgmr.msra.gmra.mxu2 %vm230_vm3, %v1139_v7  ;;  %1117 = vmatmul.msk.bf16.vlgmr.msra.gmra.mxu3 %vm230_vm3, %v1139_v7  ;;  %v563_v44 = vpop.permute.xlu0 %562 }
 0x281   :  { %1112 = vmatmul.msk.bf16.gmra.mxu0 %vm230_vm3, %v1140_v8  ;;  %1114 = vmatmul.msk.bf16.gmra.mxu1 %vm230_vm3, %v1140_v8 }
 0x282   :  { %1116 = vmatmul.msk.bf16.gmra.mxu2 %vm230_vm3, %v1140_v8  ;;  %1118 = vmatmul.msk.bf16.gmra.mxu3 %vm230_vm3, %v1140_v8 }
 0x2ee   :  { %v600_v9 = vpop.f32.mrf.mxu0  ;;  %v619_v10 = vpop.f32.mrf.mxu1 }
 0x2ef   :  { %v1467_v12 = vadd.f32 %v600_v9, %v558_v11  ;;  %v1469_v13 = vadd.f32 %v619_v10, %v558_v11 }
 0x2f1   :  { %v683_v18 = vadd.f32 %v1469_v13, %v1467_v12  ;;  %v667_v4 = vmul.f32 %v1467_v12, %v1467_v12  ;;  %v668_v5 = vmul.f32 %v1469_v13, %v1469_v13 }
 0x2f5   :  { %v638_v14 = vpop.f32.mrf.mxu2  ;;  %v657_v17 = vpop.f32.mrf.mxu3 }
 0x2f6   :  { %v1473_v20 = vadd.f32 %v638_v14, %v558_v11  ;;  %v602_v22 = vpop.f32.mrf.mxu0  ;;  %v621_v24 = vpop.f32.mrf.mxu1  ;;  %v1475_v25 = vadd.f32 %v657_v17, %v558_v11 }
 0x2f7   :  { %v1500_v1 = vadd.f32 %v602_v22, %v563_v44  ;;  %v1502_v48 = vadd.f32 %v621_v24, %v563_v44  ;;  %v703_v22 = vadd.f32 %v668_v5, %v667_v4 }
 0x2f8   :  { %v684_v26 = vadd.f32 %v683_v18, %v1473_v20  ;;  %v669_v10 = vmul.f32 %v1473_v20, %v1473_v20 }
 0x2f9   :  { %v688_v61 = vadd.f32 %v1502_v48, %v1500_v1  ;;  %v671_v0 = vmul.f32 %v1500_v1, %v1500_v1  ;;  %v672_v59 = vmul.f32 %v1502_v48, %v1502_v48 }
 0x2fa   :  { %v685_v27 = vadd.f32 %v684_v26, %v1475_v25  ;;  %v704_v26 = vadd.f32 %v703_v22, %v669_v10  ;;  %v1121_v10 = vld [vmem:[%s1654_s5 + $0x30] sm:$0xff] }
 0x2fb   :  { %v708_v17 = vadd.f32 %v672_v59, %v671_v0  ;;  %v1125_v22 = vld [vmem:[%s1655_s6 + $0x30] sm:$0xff] }
 0x2fc   :  { %686 = vadd.xlane.f32.xlu1 %v685_v27 }
 0x2fd   :  { %v640_v31 = vpop.f32.mrf.mxu2  ;;  %v659_v40 = vpop.f32.mrf.mxu3 }
 0x2fe   :  { %v605_v43 = vpop.f32.mrf.mxu0  ;;  %v624_v28 = vpop.f32.mrf.mxu1  ;;  %v1507_v52 = vadd.f32 %v640_v31, %v563_v44  ;;  %v1533_v6 = vadd.f32 %v659_v40, %v563_v44 }
 0x2ff   :  { %v1479_v29 = vadd.f32 %v605_v43, %v568_v30  ;;  %v1481_v34 = vadd.f32 %v624_v28, %v568_v30 }
 0x300   :  { %v689_v19 = vadd.f32 %v688_v61, %v1507_v52  ;;  %v673_v60 = vmul.f32 %v1507_v52, %v1507_v52  ;;  %v674_v24 = vmul.f32 %v1533_v6, %v1533_v6  ;;  %v14_v61 = vstv %s1656_s8 }
 0x301   :  { %v675_v32 = vmul.f32 %v1479_v29, %v1479_v29  ;;  %v676_v35 = vmul.f32 %v1481_v34, %v1481_v34  ;;  %v693_v16 = vadd.f32 %v1481_v34, %v1479_v29  ;;  %15 = vst [vmem:[#allocation2] sm:$0x1] %v14_v61 }
 0x302   :  { %v690_v11 = vadd.f32 %v689_v19, %v1533_v6  ;;  %v709_v18 = vadd.f32 %v708_v17, %v673_v60 }
 0x303   :  { %v713_v42 = vadd.f32 %v676_v35, %v675_v32 }
 0x304   :  { %v710_v27 = vadd.f32 %v709_v18, %v674_v24 }
 0x305   :  { %v643_v15 = vpop.f32.mrf.mxu2  ;;  %v662_v36 = vpop.f32.mrf.mxu3 }
 0x306   :  { %v1489_v38 = vadd.f32 %v643_v15, %v568_v30  ;;  %v1491_v21 = vadd.f32 %v662_v36, %v568_v30  ;;  %v607_v33 = vpop.f32.mrf.mxu0  ;;  %v626_v23 = vpop.f32.mrf.mxu1  ;;  %v670_v30 = vmul.f32 %v1475_v25, %v1475_v25 }
 0x307   :  { %v1495_v45 = vadd.f32 %v607_v33, %v573_v39  ;;  %v1497_v47 = vadd.f32 %v626_v23, %v573_v39 }
 0x308   :  { %v677_v46 = vmul.f32 %v1489_v38, %v1489_v38  ;;  %v694_v63 = vadd.f32 %v693_v16, %v1489_v38  ;;  %v678_v50 = vmul.f32 %v1491_v21, %v1491_v21  ;;  %v705_v31 = vadd.f32 %v704_v26, %v670_v30 }
 0x309   :  { %v679_v53 = vmul.f32 %v1495_v45, %v1495_v45  ;;  %v680_v54 = vmul.f32 %v1497_v47, %v1497_v47  ;;  %v698_v41 = vadd.f32 %v1497_v47, %v1495_v45 }
 0x30a   :  { %v695_v49 = vadd.f32 %v694_v63, %v1491_v21  ;;  %v714_v51 = vadd.f32 %v713_v42, %v677_v46 }
 0x30b   :  { %v718_v2 = vadd.f32 %v680_v54, %v679_v53 }
 0x30c   :  { %696 = vadd.xlane.f32.xlu2 %v695_v49  ;;  %v715_v55 = vadd.f32 %v714_v51, %v678_v50 }
 0x30d   :  { %v645_v56 = vpop.f32.mrf.mxu2  ;;  %v664_v57 = vpop.f32.mrf.mxu3 }
 0x30e   :  { %v1517_v62 = vadd.f32 %v645_v56, %v573_v39  ;;  %v1519_v58 = vadd.f32 %v664_v57, %v573_v39  ;;  %716 = vadd.xlane.f32.xlu0 %v715_v55 }
 0x310   :  { %v681_v3 = vmul.f32 %v1517_v62, %v1517_v62  ;;  %v699_v37 = vadd.f32 %v698_v41, %v1517_v62  ;;  %v682_v8 = vmul.f32 %v1519_v58, %v1519_v58 }
 0x312   :  { %v700_v7 = vadd.f32 %v699_v37, %v1519_v58  ;;  %v719_v9 = vadd.f32 %v718_v2, %v681_v3 }
 0x314   :  { %701 = vadd.xlane.f32.xlu1 %v700_v7  ;;  %v720_v14 = vadd.f32 %v719_v9, %v682_v8 }
 0x316   :  { %691 = vadd.xlane.f32.xlu0 %v690_v11  ;;  %721 = vadd.xlane.f32.xlu2 %v720_v14 }
 0x31c   :  { %711 = vadd.xlane.f32.xlu1 %v710_v27 }
 0x31e   :  { %706 = vadd.xlane.f32.xlu2 %v705_v31 }
 0x36f   :  { %v687_v40 = vpop.xlane.xlu1 %686 }
 0x370   :  { %v1553_v51 = vmul.f32 0.001953125, %v687_v40 }
 0x372   :  { %v731_v59 = vmul.f32 %v1553_v51, %v1553_v51 }
 0x37f   :  { %v697_v43 = vpop.xlane.xlu2 %696 }
 0x380   :  { %v725_v28 = vmul.f32 0.001953125, %v697_v43 }
 0x381   :  { %v717_v32 = vpop.xlane.xlu0 %716 }
 0x382   :  { %v733_v35 = vmul.f32 %v725_v28, %v725_v28  ;;  %v729_v15 = vmul.f32 0.001953125, %v717_v32 }
 0x384   :  { %v737_v36 = vsub.f32 %v729_v15, %v733_v35  ;;  %v1122_v15 = vld [vmem:[%s1654_s5 + $0x38] sm:$0xff] }
 0x386   :  { %v741_v16 = vadd.f32 1e-05, %v737_v36 }
 0x387   :  { %v702_v33 = vpop.xlane.xlu1 %701 }
 0x388   :  { %1154 = vrsqrt.f32 %v741_v16  ;;  %v1547_v23 = vmul.f32 0.001953125, %v702_v33  ;;  %vm769_vm1 = vweird.f32 %v741_v16 }
 0x389   :  { %v692_v39 = vpop.xlane.xlu0 %691  ;;  %v722_v42 = vpop.xlane.xlu2 %721 }
 0x38a   :  { %v734_v44 = vmul.f32 %v1547_v23, %v1547_v23  ;;  %v730_v46 = vmul.f32 0.001953125, %v722_v42  ;;  %v1551_v63 = vmul.f32 0.001953125, %v692_v39 }
 0x38c   :  { %v738_v49 = vsub.f32 %v730_v46, %v734_v44  ;;  %v732_v56 = vmul.f32 %v1551_v63, %v1551_v63  ;;  %v1126_v44 = vld [vmem:[%s1655_s6 + $0x38] sm:$0xff] }
 0x38e   :  { %v1155_v50 = vpop.eup %1154  ;;  %v742_v53 = vadd.f32 1e-05, %v738_v49 }
 0x38f   :  { %v764_v54 = vmul.f32 %v1155_v50, %v741_v16  ;;  %v712_v55 = vpop.xlane.xlu1 %711  ;;  %vm770_vm0 = vweird.f32 %v1155_v50 }
 0x390   :  { %1156 = vrsqrt.f32 %v742_v53  ;;  %v728_v57 = vmul.f32 0.001953125, %v712_v55  ;;  %vm771_vm2 = vmor %vm769_vm1, %vm770_vm0  ;;  %vm779_vm5 = vweird.f32 %v742_v53 }
 0x391   :  { %v765_v41 = vmul.f32 %v1155_v50, %v764_v54  ;;  %v707_v0 = vpop.xlane.xlu2 %706  ;;  %v1119_v54 = vld [vmem:[%s1654_s5 + $0x20] sm:$0xff] }
 0x392   :  { %v736_v3 = vsub.f32 %v728_v57, %v732_v56  ;;  %v727_v37 = vmul.f32 0.001953125, %v707_v0 }
 0x393   :  { %v766_v19 = vmul.f32 0.5, %v765_v41  ;;  %v1123_v41 = vld [vmem:[%s1655_s6 + $0x20] sm:$0xff] }
 0x394   :  { %v740_v2 = vadd.f32 1e-05, %v736_v3  ;;  %v735_v4 = vsub.f32 %v727_v37, %v731_v59  ;;  %v902_v37 = vld [vmem:[#allocation2] sm:$0x1] }
 0x395   :  { %v767_v5 = vsub.f32 1.5, %v766_v19 }
 0x396   :  { %v1157_v60 = vpop.eup %1156  ;;  %1158 = vrsqrt.f32 %v740_v2  ;;  %v739_v7 = vadd.f32 1e-05, %v735_v4  ;;  %vm759_vm11 = vweird.f32 %v740_v2 }
 0x397   :  { %v774_v8 = vmul.f32 %v1157_v60, %v742_v53  ;;  %v768_v9 = vmul.f32 %v1155_v50, %v767_v5  ;;  %vm780_vm4 = vweird.f32 %v1157_v60 }
 0x398   :  { %1160 = vrsqrt.f32 %v739_v7  ;;  %vm781_vm6 = vmor %vm779_vm5, %vm780_vm4  ;;  %vm749_vm8 = vweird.f32 %v739_v7 }
 0x399   :  { %v775_v11 = vmul.f32 %v1157_v60, %v774_v8  ;;  %v772_v14 = vsel %vm771_vm2, %v1155_v50, %v768_v9 }
 0x39a   :  { %v790_v17 = vmul.f32 %v1121_v10, %v772_v14 }
 0x39b   :  { %v776_v18 = vmul.f32 0.5, %v775_v11 }
 0x39c   :  { %v1159_v24 = vpop.eup %1158  ;;  %817 = vperm.xlu0 %1143, %v790_v17   ;;  %v799_v26 = vmul.f32 %v790_v17, %v725_v28 }
 0x39d   :  { %v777_v27 = vsub.f32 1.5, %v776_v18  ;;  %v754_v30 = vmul.f32 %v1159_v24, %v740_v2  ;;  %vm760_vm9 = vweird.f32 %v1159_v24  ;;  %v1124_v2 = vld [vmem:[%s1655_s6 + $0x28] sm:$0xff] }
 0x39e   :  { %v1161_v31 = vpop.eup %1160  ;;  %v803_v40 = vsub.f32 %v1125_v22, %v799_v26  ;;  %vm761_vm12 = vmor %vm759_vm11, %vm760_vm9 }
 0x39f   :  { %v778_v43 = vmul.f32 %v1157_v60, %v777_v27  ;;  %v755_v32 = vmul.f32 %v1159_v24, %v754_v30  ;;  %v744_v35 = vmul.f32 %v1161_v31, %v739_v7  ;;  %vm750_vm7 = vweird.f32 %v1161_v31 }
 0x3a0   :  { %853 = vperm.xlu1 %1144, %v803_v40   ;;  %vm751_vm10 = vmor %vm749_vm8, %vm750_vm7 }
 0x3a1   :  { %v756_v36 = vmul.f32 0.5, %v755_v32  ;;  %v745_v16 = vmul.f32 %v1161_v31, %v744_v35  ;;  %v782_v33 = vsel %vm781_vm6, %v1157_v60, %v778_v43 }
 0x3a2   :  { %v791_v39 = vmul.f32 %v1122_v15, %v782_v33 }
 0x3a3   :  { %v757_v28 = vsub.f32 1.5, %v756_v36  ;;  %v746_v42 = vmul.f32 0.5, %v745_v16 }
 0x3a4   :  { %v800_v46 = vmul.f32 %v791_v39, %v1547_v23  ;;  %v1120_v23 = vld [vmem:[%s1654_s5 + $0x28] sm:$0xff] }
 0x3a5   :  { %v747_v49 = vsub.f32 1.5, %v746_v42  ;;  %v758_v55 = vmul.f32 %v1159_v24, %v757_v28 }
 0x3a6   :  { %v804_v50 = vsub.f32 %v1126_v44, %v800_v46 }
 0x3a7   :  { %v748_v53 = vmul.f32 %v1161_v31, %v747_v49  ;;  %v762_v61 = vsel %vm761_vm12, %v1159_v24, %v758_v55  ;;  %vm1047_vm12 = vcmask 1040384  }
 0x3a8   :  { %858 = vperm.xlu0 %1143, %v804_v50   ;;  %v789_v59 = vmul.f32 %v1120_v23, %v762_v61 }
 0x3a9   :  { %v752_v56 = vsel %vm751_vm10, %v1161_v31, %v748_v53 }
 0x3aa   :  { %v788_v57 = vmul.f32 %v1119_v54, %v752_v56  ;;  %v798_v19 = vmul.f32 %v789_v59, %v1551_v63 }
 0x3ac   :  { %807 = vperm.xlu2 %1145, %v788_v57   ;;  %v797_v0 = vmul.f32 %v788_v57, %v1553_v51  ;;  %v802_v4 = vsub.f32 %v1124_v2, %v798_v19 }
 0x3ae   :  { %v801_v3 = vsub.f32 %v1123_v41, %v797_v0 }
 0x3b0   :  { %812 = vperm.xlu0 %1143, %v789_v59   ;;  %843 = vperm.xlu1 %1144, %v801_v3  }
 0x3b4   :  { %822 = vperm.xlu2 %1145, %v791_v39  }
 0x3b8   :  { %905 = vperm.xlu0 %1143, %v902_v37  }
 0x3bc   :  { %848 = vperm.xlu2 %1145, %v802_v4  }
 0x406   :  { %v808_v5 = vpop.permute.xlu2 %807 }
 0x407   :  { %v826_v28 = vmul.f32 %v808_v5, %v1469_v13  ;;  %v827_v42 = vmul.f32 %v808_v5, %v1473_v20  ;;  %v828_v44 = vmul.f32 %v808_v5, %v1475_v25 }
 0x40e   :  { %v818_v60 = vpop.permute.xlu0 %817  ;;  %v823_v11 = vpop.permute.xlu2 %822 }
 0x40f   :  { %v833_v51 = vmul.f32 %v818_v60, %v1479_v29  ;;  %v834_v8 = vmul.f32 %v818_v60, %v1481_v34  ;;  %v835_v9 = vmul.f32 %v818_v60, %v1489_v38  ;;  %v836_v10 = vmul.f32 %v818_v60, %v1491_v21 }
 0x410   :  { %v837_v22 = vmul.f32 %v823_v11, %v1495_v45  ;;  %v838_v24 = vmul.f32 %v823_v11, %v1497_v47  ;;  %v839_v26 = vmul.f32 %v823_v11, %v1517_v62  ;;  %v840_v27 = vmul.f32 %v823_v11, %v1519_v58 }
 0x411   :  { %v825_v62 = vmul.f32 %v808_v5, %v1467_v12  ;;  %v893_v5 = vld [vmem:[%s1657_s7] sm:$0x1] }
 0x412   :  { %v854_v7 = vpop.permute.xlu1 %853 }
 0x413   :  { %v869_v63 = vadd.f32 %v854_v7, %v833_v51  ;;  %v870_v14 = vadd.f32 %v854_v7, %v834_v8  ;;  %v871_v17 = vadd.f32 %v854_v7, %v835_v9  ;;  %v872_v18 = vadd.f32 %v854_v7, %v836_v10 }
 0x415   :  { %v885_v40 = vmax.f32 %v869_v63, 0.0  ;;  %v886_v21 = vmax.f32 %v870_v14, 0.0  ;;  %v887_v43 = vmax.f32 %v871_v17, 0.0  ;;  %v888_v32 = vmax.f32 %v872_v18, 0.0 }
 0x416   :  { %v849_v55 = vpop.permute.xlu2 %848 }
 0x41a   :  { %v859_v29 = vpop.permute.xlu0 %858 }
 0x41b   :  { %v873_v30 = vadd.f32 %v859_v29, %v837_v22  ;;  %v874_v34 = vadd.f32 %v859_v29, %v838_v24  ;;  %v875_v31 = vadd.f32 %v859_v29, %v839_v26  ;;  %v876_v38 = vadd.f32 %v859_v29, %v840_v27 }
 0x41d   :  { %v889_v35 = vmax.f32 %v873_v30, 0.0  ;;  %v890_v15 = vmax.f32 %v874_v34, 0.0  ;;  %v891_v36 = vmax.f32 %v875_v31, 0.0  ;;  %v892_v16 = vmax.f32 %v876_v38, 0.0 }
 0x41f   :  { %v898_v45 = vpack.c.bf16 %v889_v35, %v885_v40  ;;  %v899_v33 = vpack.c.bf16 %v890_v15, %v886_v21  ;;  %v900_v47 = vpack.c.bf16 %v891_v36, %v887_v43  ;;  %v901_v39 = vpack.c.bf16 %v892_v16, %v888_v32 }
 0x421   :  { %918 = vmatpush.bf16.msrb.mxu0 %v898_v45  ;;  %931 = vmatpush.bf16.msrb.mxu1 %v899_v33 }
 0x422   :  { %944 = vmatpush.bf16.msrb.mxu2 %v900_v47  ;;  %957 = vmatpush.bf16.msrb.mxu3 %v901_v39  ;;  %v813_v58 = vpop.permute.xlu0 %812  ;;  %v844_v46 = vpop.permute.xlu1 %843 }
 0x423   :  { %v829_v49 = vmul.f32 %v813_v58, %v1500_v1  ;;  %v830_v50 = vmul.f32 %v813_v58, %v1502_v48  ;;  %v831_v53 = vmul.f32 %v813_v58, %v1507_v52  ;;  %v832_v54 = vmul.f32 %v813_v58, %v1533_v6 }
 0x424   :  { %v861_v12 = vadd.f32 %v844_v46, %v825_v62  ;;  %v862_v56 = vadd.f32 %v844_v46, %v826_v28  ;;  %v863_v57 = vadd.f32 %v844_v46, %v827_v42  ;;  %v864_v61 = vadd.f32 %v844_v46, %v828_v44 }
 0x425   :  { %v865_v23 = vadd.f32 %v849_v55, %v829_v49  ;;  %v866_v13 = vadd.f32 %v849_v55, %v830_v50  ;;  %v867_v41 = vadd.f32 %v849_v55, %v831_v53  ;;  %v868_v20 = vadd.f32 %v849_v55, %v832_v54 }
 0x426   :  { %v877_v0 = vmax.f32 %v861_v12, 0.0  ;;  %v878_v25 = vmax.f32 %v862_v56, 0.0  ;;  %v879_v59 = vmax.f32 %v863_v57, 0.0  ;;  %v880_v3 = vmax.f32 %v864_v61, 0.0 }
 0x427   :  { %v881_v1 = vmax.f32 %v865_v23, 0.0  ;;  %v882_v37 = vmax.f32 %v866_v13, 0.0  ;;  %v883_v48 = vmax.f32 %v867_v41, 0.0  ;;  %v884_v19 = vmax.f32 %v868_v20, 0.0 }
 0x429   :  { %v894_v52 = vpack.c.bf16 %v881_v1, %v877_v0  ;;  %v895_v2 = vpack.c.bf16 %v882_v37, %v878_v25  ;;  %v896_v6 = vpack.c.bf16 %v883_v48, %v879_v59  ;;  %v897_v4 = vpack.c.bf16 %v884_v19, %v880_v3 }
 0x42a   :  { %v906_v60 = vpop.permute.xlu0 %905 }
 0x42b   :  { %919 = vmatpush.bf16.msrb.mxu0 %v894_v52  ;;  %932 = vmatpush.bf16.msrb.mxu1 %v895_v2  ;;  %v908_v7 = vperm.slane %v906_v60, 0  ;;  %v1054_v60 = vlaneseq }
 0x42c   :  { %945 = vmatpush.bf16.msrb.mxu2 %v896_v6  ;;  %958 = vmatpush.bf16.msrb.mxu3 %v897_v4 }
 0x42e   :  { %1127 = vmatmul.msk.bf16.vlgmr.msrb.gmra.mxu0 %vm230_vm3, %v893_v5  ;;  %1128 = vmatmul.msk.bf16.vlgmr.msrb.gmra.mxu1 %vm230_vm3, %v893_v5 }
 0x42f   :  { %1129 = vmatmul.msk.bf16.vlgmr.msrb.gmra.mxu2 %vm230_vm3, %v893_v5  ;;  %1130 = vmatmul.msk.bf16.vlgmr.msrb.gmra.mxu3 %vm230_vm3, %v893_v5 }
 0x4ab   :  { %v921_v51 = vpop.f32.mrf.mxu0  ;;  %v934_v8 = vpop.f32.mrf.mxu1 }
 0x4ac   :  { %v922_v9 = vadd.f32 %v921_v51, %v908_v7  ;;  %v935_v10 = vadd.f32 %v934_v8, %v908_v7 }
 0x4ae   :  { %v1131_v11 = vmul.f32 -1.442695, %v922_v9  ;;  %v1132_v63 = vmul.f32 -1.442695, %v935_v10 }
 0x4b0   :  { %1162 = vpow2.f32 %v1131_v11 }
 0x4b1   :  { %1164 = vpow2.f32 %v1132_v63 }
 0x4b2   :  { %v947_v14 = vpop.f32.mrf.mxu2  ;;  %v960_v17 = vpop.f32.mrf.mxu3 }
 0x4b3   :  { %v948_v18 = vadd.f32 %v947_v14, %v908_v7  ;;  %v961_v22 = vadd.f32 %v960_v17, %v908_v7  ;;  %v936_v24 = vpop.f32.mrf.mxu1  ;;  %v923_v26 = vpop.f32.mrf.mxu0 }
 0x4b5   :  { %v1133_v27 = vmul.f32 -1.442695, %v948_v18  ;;  %v1134_v29 = vmul.f32 -1.442695, %v961_v22 }
 0x4b6   :  { %v1163_v30 = vpop.eup %1162 }
 0x4b7   :  { %v1165_v34 = vpop.eup %1164  ;;  %v1612_v31 = vadd.f32 1.0, %v1163_v30  ;;  %1166 = vpow2.f32 %v1133_v27 }
 0x4b8   :  { %v977_v38 = vadd.f32 1.0, %v1165_v34  ;;  %1168 = vpow2.f32 %v1134_v29 }
 0x4b9   :  { %1170 = vrcp.f32 %v1612_v31  ;;  %vm985_vm13 = vweird.f32 %v1612_v31  ;;  %v989_v1 = vand.u32 2147483647, %v1612_v31  ;;  %v991_v37 = vand.u32 2147483648, %v1612_v31 }
 0x4ba   :  { %1172 = vrcp.f32 %v977_v38  ;;  %v949_v40 = vpop.f32.mrf.mxu2  ;;  %v962_v21 = vpop.f32.mrf.mxu3  ;;  %v1004_v28 = vand.u32 2147483647, %v977_v38  ;;  %v1006_v42 = vand.u32 2147483648, %v977_v38  ;;  %vm1000_vm14 = vweird.f32 %v977_v38 }
 0x4bb   :  { %v992_v10 = vor.u32 1.1754944e-38, %v991_v37 }
 0x4bc   :  { %vm1625_vm0 = vcmp.eq.f32.partialorder %v1004_v28, 8.507059e+37  ;;  %v1007_v56 = vor.u32 1.1754944e-38, %v1006_v42 }
 0x4bd   :  { %v1167_v43 = vpop.eup %1166 }
 0x4be   :  { %v1169_v32 = vpop.eup %1168  ;;  %v978_v35 = vadd.f32 1.0, %v1167_v43 }
 0x4bf   :  { %v1615_v15 = vpop.eup %1170  ;;  %v979_v36 = vadd.f32 1.0, %v1169_v32 }
 0x4c0   :  { %v1173_v16 = vpop.eup %1172  ;;  %1174 = vrcp.f32 %v978_v35  ;;  %v981_v45 = vmul.f32 %v1615_v15, %v1612_v31  ;;  %v1019_v57 = vand.u32 2147483647, %v978_v35  ;;  %v1021_v61 = vand.u32 2147483648, %v978_v35 }
 0x4c1   :  { %v996_v33 = vmul.f32 %v1173_v16, %v977_v38  ;;  %1176 = vrcp.f32 %v979_v36  ;;  %vm1001_vm3 = vweird.f32 %v1173_v16  ;;  %vm986_vm2 = vweird.f32 %v1615_v15 }
 0x4c2   :  { %v982_v39 = vsub.f32 1.0, %v981_v45  ;;  %vm1621_vm15 = vmor %vm1000_vm14, %vm1001_vm3  ;;  %vm1015_vm4 = vweird.f32 %v978_v35  ;;  %v1034_v20 = vand.u32 2147483647, %v979_v36  ;;  %v1036_v0 = vand.u32 2147483648, %v979_v36 }
 0x4c3   :  { %v997_v47 = vsub.f32 1.0, %v996_v33  ;;  %v1022_v19 = vor.u32 1.1754944e-38, %v1021_v61  ;;  %vm1639_vm7 = vmor %vm985_vm13, %vm986_vm2  ;;  %vm1020_vm8 = vcmp.eq.f32.partialorder %v1019_v57, 8.507059e+37  ;;  %vm1030_vm9 = vweird.f32 %v979_v36 }
 0x4c4   :  { %v983_v50 = vmul.f32 %v1615_v15, %v982_v39  ;;  %vm1035_vm11 = vcmp.eq.f32.partialorder %v1034_v20, 8.507059e+37  ;;  %v1037_v5 = vor.u32 1.1754944e-38, %v1036_v0  ;;  %vm1049_vm3 = vcmask 1042434  }
 0x4c5   :  { %v998_v62 = vmul.f32 %v1173_v16, %v997_v47  ;;  %vm990_vm13 = vcmp.eq.f32.partialorder %v989_v1, 8.507059e+37  ;;  %vm1051_vm14 = vcmask 1041408  }
 0x4c6   :  { %v1175_v58 = vpop.eup %1174  ;;  %v984_v25 = vadd.f32 %v1615_v15, %v983_v50 }
 0x4c7   :  { %v999_v44 = vadd.f32 %v1173_v16, %v998_v62  ;;  %v1011_v46 = vmul.f32 %v1175_v58, %v978_v35  ;;  %v1177_v49 = vpop.eup %1176  ;;  %vm1016_vm1 = vweird.f32 %v1175_v58 }
 0x4c8   :  { %v1026_v54 = vmul.f32 %v1177_v49, %v979_v36  ;;  %vm1031_vm5 = vweird.f32 %v1177_v49  ;;  %vm1017_vm6 = vmor %vm1015_vm4, %vm1016_vm1  ;;  %v988_v7 = vsel %vm1639_vm7, %v1615_v15, %v984_v25 }
 0x4c9   :  { %v1012_v53 = vsub.f32 1.0, %v1011_v46  ;;  %v1003_v23 = vsel %vm1621_vm15, %v1173_v16, %v999_v44  ;;  %vm1032_vm10 = vmor %vm1030_vm9, %vm1031_vm5  ;;  %v993_v14 = vsel %vm990_vm13, %v992_v10, %v988_v7  ;;  %vm1056_vm15 = vcmp.lt.s32.totalorder %v1054_v60, 512 }
 0x4ca   :  { %v1027_v41 = vsub.f32 1.0, %v1026_v54  ;;  %v1008_v48 = vsel %vm1625_vm0, %v1007_v56, %v1003_v23 }
 0x4cb   :  { %v1013_v13 = vmul.f32 %v1175_v58, %v1012_v53  ;;  %v1044_v51 = vrot.slane %v1008_v48, 7 }
 0x4cc   :  { %v1028_v3 = vmul.f32 %v1177_v49, %v1027_v41 }
 0x4cd   :  { %v1014_v59 = vadd.f32 %v1175_v58, %v1013_v13  ;;  %v1048_v17 = vsel %vm1047_vm12, %v993_v14, %v1044_v51 }
 0x4ce   :  { %v1029_v6 = vadd.f32 %v1177_v49, %v1028_v3 }
 0x4cf   :  { %v1018_v2 = vsel %vm1017_vm6, %v1175_v58, %v1014_v59 }
 0x4d0   :  { %v1023_v4 = vsel %vm1020_vm8, %v1022_v19, %v1018_v2  ;;  %v1033_v9 = vsel %vm1032_vm10, %v1177_v49, %v1029_v6 }
 0x4d1   :  { %v1045_v8 = vrot.slane %v1023_v4, 6  ;;  %v1038_v11 = vsel %vm1035_vm11, %v1037_v5, %v1033_v9 }
 0x4d2   :  { %v1046_v63 = vrot.slane %v1038_v11, 5 }
 0x4d4   :  { %v1050_v18 = vsel %vm1049_vm3, %v1045_v8, %v1046_v63 }
 0x4d5   :  { %v1052_v22 = vsel %vm1051_vm14, %v1048_v17, %v1050_v18 }
 0x4d6   :  { %1058 = vst.msk [vmem:[%s1658_s9] sm:$0xf] %vm1056_vm15, %v1052_v22 }

</bundles_post_ra>
